<compile_context>
chip_gen: v7x
topology: tpu7x:2x2x1
jax: 0.10.0
libtpu: 0.0.40
codegen_flags: <defaults>
</compile_context>

<pallas_src>
import functools

import jax
import jax.numpy as jnp
from jax.experimental import pallas as pl
from jax.experimental.pallas import tpu as pltpu


def _gru_seq_kernel(x_ref, h0_ref, wh_ref, slab_ref, y_ref, hn_ref):
    """Whole-sequence GRU + fused scalar output head, one kernel invocation.

    x_ref:    (B, T)     lane-dense inputs (D_in == 1)
    h0_ref:   (B, H)
    wh_ref:   (H, 3H)    fused [W_hr | W_hz | W_hn]^T
    slab_ref: (4, 3H)    row 0: w_ih row (D_in == 1)
                         row 1: b_ih + [b_hh_r, b_hh_z, 0]
                         row 2: [0, 0, b_hh_n]        (used at cols 2H:3H)
                         row 3: [w_fc row (H), b_fc, 0...]
    y_ref:    (B, T)     lane-dense outputs (D_out == 1)
    hn_ref:   (B, H)
    """
    B, T = x_ref.shape
    H = h0_ref.shape[1]

    # Loop-invariant operands: load once, outside the recurrence.
    wh = wh_ref[...]                        # (H, 3H)  -- stays the MXU RHS
    wi = slab_ref[0:1, :]                   # (1, 3H)
    b_comb = slab_ref[1:2, :]               # (1, 3H)  b_ih + b_hh for r/z gates
    bh_n = slab_ref[2:3, 2 * H:3 * H]       # (1, H)   b_hh for n gate
    wfc = slab_ref[3:4, 0:H]                # (1, H)
    bfc = slab_ref[3:4, H:H + 1]            # (1, 1)

    # Recurrence: fully unrolled at trace time (T static & small). h is a plain
    # value (vregs); no per-step Ref round-trip.
    h = h0_ref[...]                         # (B, H)
    ys = []
    for t in range(T):
        # Off the h critical path: input projection is a VPU broadcast multiply
        # (D_in == 1), with both gate biases for r/z pre-folded in.
        x_t = x_ref[:, t:t + 1]                                     # (B, 1)
        gi = x_t * wi + b_comb                                      # (B, 3H)

        # On the critical path: one fused (B,H)x(H,3H) MXU matmul per step.
        gh = jnp.dot(h, wh, preferred_element_type=jnp.float32)     # (B, 3H)

        r = jax.nn.sigmoid(gi[:, 0:H] + gh[:, 0:H])
        z = jax.nn.sigmoid(gi[:, H:2 * H] + gh[:, H:2 * H])
        n = jnp.tanh(gi[:, 2 * H:3 * H] + r * (gh[:, 2 * H:3 * H] + bh_n))
        h = (1.0 - z) * n + z * h

        # Per-timestep FC (D_out == 1): VPU multiply + lane reduction, off the
        # h dependency chain.
        ys.append(jnp.sum(h * wfc, axis=-1, keepdims=True) + bfc)   # (B, 1)

    hn_ref[...] = h
    # Single lane-dense writeback of all timesteps.
    y_ref[...] = jnp.concatenate(ys, axis=1)                        # (B, T)


def gru_model_forward(x, h_state, params):
    """Pallas implementation of GRUModel.forward.

    x:        (B, T, 1)  float32
    h_state:  (1, B, H)  float32  (num_layers == 1)
    returns:  (Outputs (B, T, 1), h_state_n (1, B, H))
    """
    B, T, D_in = x.shape
    H = params["w_hh"].shape[1]
    D_out = params["w_fc"].shape[0]
    # TODO(synk): kernel is specialized for the module defaults D_in == D_out == 1
    # (univariate Mackey-Glass); general D_in/D_out would need the MXU-dot paths back.
    assert D_in == 1 and D_out == 1

    # --- glue: fuse / lay out parameters (plain JAX, outside the kernel) ---
    wh = params["w_hh"].T                                   # (H, 3H), cols [r|z|n]
    wi_row = params["w_ih"][:, 0]                           # (3H,)
    zeros_h = jnp.zeros((H,), jnp.float32)
    b_comb = params["b_ih"] + jnp.concatenate([params["b_hh"][:2 * H], zeros_h])
    bhn_row = jnp.concatenate([zeros_h, zeros_h, params["b_hh"][2 * H:]])
    fc_row = (jnp.zeros((3 * H,), jnp.float32)
              .at[:H].set(params["w_fc"][0])
              .at[H].set(params["b_fc"][0]))
    slab = jnp.stack([wi_row, b_comb, bhn_row, fc_row], axis=0)   # (4, 3H)

    x2 = x[..., 0]                                          # (B, T) lane-dense
    h0 = h_state[0]                                         # (B, H)

    vmem = pl.BlockSpec(memory_space=pltpu.MemorySpace.VMEM)
    y, h_n = pl.pallas_call(
        _gru_seq_kernel,
        out_shape=(
            jax.ShapeDtypeStruct((B, T), jnp.float32),
            jax.ShapeDtypeStruct((B, H), jnp.float32),
        ),
        in_specs=[vmem] * 4,
        out_specs=(vmem, vmem),
    )(x2, h0, wh, slab)

    return y[..., None], h_n[None]                          # (B,T,1), (1,B,H)


def _reference_forward(x, h_state, params):
    """Pure-JAX reference (mirrors torch.nn.GRU + per-step Linear)."""
    H = params["w_hh"].shape[1]
    w_ih, w_hh = params["w_ih"], params["w_hh"]
    b_ih, b_hh = params["b_ih"], params["b_hh"]
    w_fc, b_fc = params["w_fc"], params["b_fc"]

    def step(h, x_t):
        gi = x_t @ w_ih.T + b_ih
        gh = h @ w_hh.T + b_hh
        r = jax.nn.sigmoid(gi[:, :H] + gh[:, :H])
        z = jax.nn.sigmoid(gi[:, H:2 * H] + gh[:, H:2 * H])
        n = jnp.tanh(gi[:, 2 * H:] + r * gh[:, 2 * H:])
        h_new = (1.0 - z) * n + z * h
        y = h_new @ w_fc.T + b_fc
        return h_new, y

    h_last, ys = jax.lax.scan(step, h_state[0], jnp.transpose(x, (1, 0, 2)))
    return jnp.transpose(ys, (1, 0, 2)), h_last[None]


def make_params(key, input_dim, hidden_size, output_dim):
    """Deterministic init matching PyTorch's U(-1/sqrt(H), 1/sqrt(H)) default."""
    k = 1.0 / jnp.sqrt(jnp.float32(hidden_size))
    keys = jax.random.split(key, 6)
    u = lambda kk, shape: jax.random.uniform(kk, shape, jnp.float32, -k, k)
    return {
        "w_ih": u(keys[0], (3 * hidden_size, input_dim)),
        "w_hh": u(keys[1], (3 * hidden_size, hidden_size)),
        "b_ih": u(keys[2], (3 * hidden_size,)),
        "b_hh": u(keys[3], (3 * hidden_size,)),
        "w_fc": u(keys[4], (output_dim, hidden_size)),
        "b_fc": u(keys[5], (output_dim,)),
    }


if __name__ == "__main__":
    B, T = 2, 8
    input_dim, hidden_size, output_dim = 1, 32, 1

    key = jax.random.PRNGKey(0)
    k_x, k_p = jax.random.split(key)
    x = jax.random.normal(k_x, (B, T, input_dim), jnp.float32)
    h_state = jnp.zeros((1, B, hidden_size), jnp.float32)   # GRUModel.initHidden
    params = make_params(k_p, input_dim, hidden_size, output_dim)

    fwd = jax.jit(functools.partial(gru_model_forward, params=params))
    outputs, h_n = fwd(x, h_state)
    jax.block_until_ready((outputs, h_n))

    ref_out, ref_hn = _reference_forward(x, h_state, params)
    assert outputs.shape == (B, T, output_dim)
    assert h_n.shape == (1, B, hidden_size)
    assert jnp.allclose(outputs, ref_out, atol=1e-5, rtol=1e-5)
    assert jnp.allclose(h_n, ref_hn, atol=1e-5, rtol=1e-5)

    print("KERNEL_OK")
</pallas_src>

<mosaic_0001>
module attributes {stable_mosaic.version = 11 : i64} {
  func.func @_gru_seq_kernel(%arg0: memref<2x8xf32, #tpu.memory_space<vmem>>, %arg1: memref<2x32xf32, #tpu.memory_space<vmem>>, %arg2: memref<32x96xf32, #tpu.memory_space<vmem>>, %arg3: memref<4x96xf32, #tpu.memory_space<vmem>>, %arg4: memref<2x8xf32, #tpu.memory_space<vmem>>, %arg5: memref<2x32xf32, #tpu.memory_space<vmem>>) attributes {dimension_semantics = [], scalar_prefetch = 0 : i64, scratch_operands = 0 : i64, tpu.core_type = #tpu.core_type<tc>} {
    %c0 = arith.constant 0 : index
    %c0_0 = arith.constant 0 : index
    %0 = vector.load %arg2[%c0, %c0_0] : memref<32x96xf32, #tpu.memory_space<vmem>>, vector<32x96xf32>
    %c0_1 = arith.constant 0 : index
    %c0_2 = arith.constant 0 : index
    %1 = vector.load %arg3[%c0_1, %c0_2] : memref<4x96xf32, #tpu.memory_space<vmem>>, vector<1x96xf32>
    %c1 = arith.constant 1 : index
    %c0_3 = arith.constant 0 : index
    %2 = vector.load %arg3[%c1, %c0_3] : memref<4x96xf32, #tpu.memory_space<vmem>>, vector<1x96xf32>
    %c2 = arith.constant 2 : index
    %c64 = arith.constant 64 : index
    %3 = vector.load %arg3[%c2, %c64] : memref<4x96xf32, #tpu.memory_space<vmem>>, vector<1x32xf32>
    %c3 = arith.constant 3 : index
    %c0_4 = arith.constant 0 : index
    %4 = vector.load %arg3[%c3, %c0_4] : memref<4x96xf32, #tpu.memory_space<vmem>>, vector<1x32xf32>
    %c3_5 = arith.constant 3 : index
    %c32 = arith.constant 32 : index
    %5 = vector.load %arg3[%c3_5, %c32] : memref<4x96xf32, #tpu.memory_space<vmem>>, vector<1x1xf32>
    %c0_6 = arith.constant 0 : index
    %c0_7 = arith.constant 0 : index
    %6 = vector.load %arg1[%c0_6, %c0_7] : memref<2x32xf32, #tpu.memory_space<vmem>>, vector<2x32xf32>
    %c0_8 = arith.constant 0 : index
    %c0_9 = arith.constant 0 : index
    %7 = vector.load %arg0[%c0_8, %c0_9] : memref<2x8xf32, #tpu.memory_space<vmem>>, vector<2x1xf32>
    %8 = vector.broadcast %7 : vector<2x1xf32> to vector<2x96xf32>
    %9 = vector.broadcast %1 : vector<1x96xf32> to vector<2x96xf32>
    %10 = arith.mulf %8, %9 : vector<2x96xf32>
    %11 = vector.broadcast %2 : vector<1x96xf32> to vector<2x96xf32>
    %12 = arith.addf %10, %11 : vector<2x96xf32>
    %cst = arith.constant dense<0.000000e+00> : vector<2x96xf32>
    %13 = tpu.matmul %6, %0, %cst {dimension_numbers = #tpu.dot_dimension_numbers<[1], [0], [0], [1], [0, 0, 1, 1], [], []>} : vector<2x32xf32>, vector<32x96xf32>, vector<2x96xf32> -> vector<2x96xf32>
    %14 = vector.extract_strided_slice %12 {offsets = [0, 0], sizes = [2, 32], strides = [1, 1]} : vector<2x96xf32> to vector<2x32xf32>
    %15 = vector.extract_strided_slice %13 {offsets = [0, 0], sizes = [2, 32], strides = [1, 1]} : vector<2x96xf32> to vector<2x32xf32>
    %16 = arith.addf %14, %15 : vector<2x32xf32>
    %17 = arith.negf %16 : vector<2x32xf32>
    %18 = math.exp %17 : vector<2x32xf32>
    %cst_10 = arith.constant 1.000000e+00 : f32
    %19 = vector.broadcast %cst_10 : f32 to vector<2x32xf32>
    %20 = arith.addf %19, %18 : vector<2x32xf32>
    %21 = arith.divf %19, %20 : vector<2x32xf32>
    %22 = vector.extract_strided_slice %12 {offsets = [0, 32], sizes = [2, 32], strides = [1, 1]} : vector<2x96xf32> to vector<2x32xf32>
    %23 = vector.extract_strided_slice %13 {offsets = [0, 32], sizes = [2, 32], strides = [1, 1]} : vector<2x96xf32> to vector<2x32xf32>
    %24 = arith.addf %22, %23 : vector<2x32xf32>
    %25 = arith.negf %24 : vector<2x32xf32>
    %26 = math.exp %25 : vector<2x32xf32>
    %cst_11 = arith.constant 1.000000e+00 : f32
    %27 = vector.broadcast %cst_11 : f32 to vector<2x32xf32>
    %28 = arith.addf %27, %26 : vector<2x32xf32>
    %29 = arith.divf %27, %28 : vector<2x32xf32>
    %30 = vector.extract_strided_slice %12 {offsets = [0, 64], sizes = [2, 32], strides = [1, 1]} : vector<2x96xf32> to vector<2x32xf32>
    %31 = vector.extract_strided_slice %13 {offsets = [0, 64], sizes = [2, 32], strides = [1, 1]} : vector<2x96xf32> to vector<2x32xf32>
    %32 = vector.broadcast %3 : vector<1x32xf32> to vector<2x32xf32>
    %33 = arith.addf %31, %32 : vector<2x32xf32>
    %34 = arith.mulf %21, %33 : vector<2x32xf32>
    %35 = arith.addf %30, %34 : vector<2x32xf32>
    %36 = math.tanh %35 : vector<2x32xf32>
    %cst_12 = arith.constant 1.000000e+00 : f32
    %37 = vector.broadcast %cst_12 : f32 to vector<2x32xf32>
    %38 = arith.subf %37, %29 : vector<2x32xf32>
    %39 = arith.mulf %38, %36 : vector<2x32xf32>
    %40 = arith.mulf %29, %6 : vector<2x32xf32>
    %41 = arith.addf %39, %40 : vector<2x32xf32>
    %42 = vector.broadcast %4 : vector<1x32xf32> to vector<2x32xf32>
    %43 = arith.mulf %41, %42 : vector<2x32xf32>
    %cst_13 = arith.constant dense<0.000000e+00> : vector<2xf32>
    %44 = vector.multi_reduction <add>, %43, %cst_13 [1] : vector<2x32xf32> to vector<2xf32>
    %45 = vector.shape_cast %44 : vector<2xf32> to vector<2x1xf32>
    %46 = vector.broadcast %5 : vector<1x1xf32> to vector<2x1xf32>
    %47 = arith.addf %45, %46 : vector<2x1xf32>
    %c0_14 = arith.constant 0 : index
    %c1_15 = arith.constant 1 : index
    %48 = vector.load %arg0[%c0_14, %c1_15] : memref<2x8xf32, #tpu.memory_space<vmem>>, vector<2x1xf32>
    %49 = vector.broadcast %48 : vector<2x1xf32> to vector<2x96xf32>
    %50 = vector.broadcast %1 : vector<1x96xf32> to vector<2x96xf32>
    %51 = arith.mulf %49, %50 : vector<2x96xf32>
    %52 = vector.broadcast %2 : vector<1x96xf32> to vector<2x96xf32>
    %53 = arith.addf %51, %52 : vector<2x96xf32>
    %cst_16 = arith.constant dense<0.000000e+00> : vector<2x96xf32>
    %54 = tpu.matmul %41, %0, %cst_16 {dimension_numbers = #tpu.dot_dimension_numbers<[1], [0], [0], [1], [0, 0, 1, 1], [], []>} : vector<2x32xf32>, vector<32x96xf32>, vector<2x96xf32> -> vector<2x96xf32>
    %55 = vector.extract_strided_slice %53 {offsets = [0, 0], sizes = [2, 32], strides = [1, 1]} : vector<2x96xf32> to vector<2x32xf32>
    %56 = vector.extract_strided_slice %54 {offsets = [0, 0], sizes = [2, 32], strides = [1, 1]} : vector<2x96xf32> to vector<2x32xf32>
    %57 = arith.addf %55, %56 : vector<2x32xf32>
    %58 = arith.negf %57 : vector<2x32xf32>
    %59 = math.exp %58 : vector<2x32xf32>
    %cst_17 = arith.constant 1.000000e+00 : f32
    %60 = vector.broadcast %cst_17 : f32 to vector<2x32xf32>
    %61 = arith.addf %60, %59 : vector<2x32xf32>
    %62 = arith.divf %60, %61 : vector<2x32xf32>
    %63 = vector.extract_strided_slice %53 {offsets = [0, 32], sizes = [2, 32], strides = [1, 1]} : vector<2x96xf32> to vector<2x32xf32>
    %64 = vector.extract_strided_slice %54 {offsets = [0, 32], sizes = [2, 32], strides = [1, 1]} : vector<2x96xf32> to vector<2x32xf32>
    %65 = arith.addf %63, %64 : vector<2x32xf32>
    %66 = arith.negf %65 : vector<2x32xf32>
    %67 = math.exp %66 : vector<2x32xf32>
    %cst_18 = arith.constant 1.000000e+00 : f32
    %68 = vector.broadcast %cst_18 : f32 to vector<2x32xf32>
    %69 = arith.addf %68, %67 : vector<2x32xf32>
    %70 = arith.divf %68, %69 : vector<2x32xf32>
    %71 = vector.extract_strided_slice %53 {offsets = [0, 64], sizes = [2, 32], strides = [1, 1]} : vector<2x96xf32> to vector<2x32xf32>
    %72 = vector.extract_strided_slice %54 {offsets = [0, 64], sizes = [2, 32], strides = [1, 1]} : vector<2x96xf32> to vector<2x32xf32>
    %73 = vector.broadcast %3 : vector<1x32xf32> to vector<2x32xf32>
    %74 = arith.addf %72, %73 : vector<2x32xf32>
    %75 = arith.mulf %62, %74 : vector<2x32xf32>
    %76 = arith.addf %71, %75 : vector<2x32xf32>
    %77 = math.tanh %76 : vector<2x32xf32>
    %cst_19 = arith.constant 1.000000e+00 : f32
    %78 = vector.broadcast %cst_19 : f32 to vector<2x32xf32>
    %79 = arith.subf %78, %70 : vector<2x32xf32>
    %80 = arith.mulf %79, %77 : vector<2x32xf32>
    %81 = arith.mulf %70, %41 : vector<2x32xf32>
    %82 = arith.addf %80, %81 : vector<2x32xf32>
    %83 = vector.broadcast %4 : vector<1x32xf32> to vector<2x32xf32>
    %84 = arith.mulf %82, %83 : vector<2x32xf32>
    %cst_20 = arith.constant dense<0.000000e+00> : vector<2xf32>
    %85 = vector.multi_reduction <add>, %84, %cst_20 [1] : vector<2x32xf32> to vector<2xf32>
    %86 = vector.shape_cast %85 : vector<2xf32> to vector<2x1xf32>
    %87 = vector.broadcast %5 : vector<1x1xf32> to vector<2x1xf32>
    %88 = arith.addf %86, %87 : vector<2x1xf32>
    %c0_21 = arith.constant 0 : index
    %c2_22 = arith.constant 2 : index
    %89 = vector.load %arg0[%c0_21, %c2_22] : memref<2x8xf32, #tpu.memory_space<vmem>>, vector<2x1xf32>
    %90 = vector.broadcast %89 : vector<2x1xf32> to vector<2x96xf32>
    %91 = vector.broadcast %1 : vector<1x96xf32> to vector<2x96xf32>
    %92 = arith.mulf %90, %91 : vector<2x96xf32>
    %93 = vector.broadcast %2 : vector<1x96xf32> to vector<2x96xf32>
    %94 = arith.addf %92, %93 : vector<2x96xf32>
    %cst_23 = arith.constant dense<0.000000e+00> : vector<2x96xf32>
    %95 = tpu.matmul %82, %0, %cst_23 {dimension_numbers = #tpu.dot_dimension_numbers<[1], [0], [0], [1], [0, 0, 1, 1], [], []>} : vector<2x32xf32>, vector<32x96xf32>, vector<2x96xf32> -> vector<2x96xf32>
    %96 = vector.extract_strided_slice %94 {offsets = [0, 0], sizes = [2, 32], strides = [1, 1]} : vector<2x96xf32> to vector<2x32xf32>
    %97 = vector.extract_strided_slice %95 {offsets = [0, 0], sizes = [2, 32], strides = [1, 1]} : vector<2x96xf32> to vector<2x32xf32>
    %98 = arith.addf %96, %97 : vector<2x32xf32>
    %99 = arith.negf %98 : vector<2x32xf32>
    %100 = math.exp %99 : vector<2x32xf32>
    %cst_24 = arith.constant 1.000000e+00 : f32
    %101 = vector.broadcast %cst_24 : f32 to vector<2x32xf32>
    %102 = arith.addf %101, %100 : vector<2x32xf32>
    %103 = arith.divf %101, %102 : vector<2x32xf32>
    %104 = vector.extract_strided_slice %94 {offsets = [0, 32], sizes = [2, 32], strides = [1, 1]} : vector<2x96xf32> to vector<2x32xf32>
    %105 = vector.extract_strided_slice %95 {offsets = [0, 32], sizes = [2, 32], strides = [1, 1]} : vector<2x96xf32> to vector<2x32xf32>
    %106 = arith.addf %104, %105 : vector<2x32xf32>
    %107 = arith.negf %106 : vector<2x32xf32>
    %108 = math.exp %107 : vector<2x32xf32>
    %cst_25 = arith.constant 1.000000e+00 : f32
    %109 = vector.broadcast %cst_25 : f32 to vector<2x32xf32>
    %110 = arith.addf %109, %108 : vector<2x32xf32>
    %111 = arith.divf %109, %110 : vector<2x32xf32>
    %112 = vector.extract_strided_slice %94 {offsets = [0, 64], sizes = [2, 32], strides = [1, 1]} : vector<2x96xf32> to vector<2x32xf32>
    %113 = vector.extract_strided_slice %95 {offsets = [0, 64], sizes = [2, 32], strides = [1, 1]} : vector<2x96xf32> to vector<2x32xf32>
    %114 = vector.broadcast %3 : vector<1x32xf32> to vector<2x32xf32>
    %115 = arith.addf %113, %114 : vector<2x32xf32>
    %116 = arith.mulf %103, %115 : vector<2x32xf32>
    %117 = arith.addf %112, %116 : vector<2x32xf32>
    %118 = math.tanh %117 : vector<2x32xf32>
    %cst_26 = arith.constant 1.000000e+00 : f32
    %119 = vector.broadcast %cst_26 : f32 to vector<2x32xf32>
    %120 = arith.subf %119, %111 : vector<2x32xf32>
    %121 = arith.mulf %120, %118 : vector<2x32xf32>
    %122 = arith.mulf %111, %82 : vector<2x32xf32>
    %123 = arith.addf %121, %122 : vector<2x32xf32>
    %124 = vector.broadcast %4 : vector<1x32xf32> to vector<2x32xf32>
    %125 = arith.mulf %123, %124 : vector<2x32xf32>
    %cst_27 = arith.constant dense<0.000000e+00> : vector<2xf32>
    %126 = vector.multi_reduction <add>, %125, %cst_27 [1] : vector<2x32xf32> to vector<2xf32>
    %127 = vector.shape_cast %126 : vector<2xf32> to vector<2x1xf32>
    %128 = vector.broadcast %5 : vector<1x1xf32> to vector<2x1xf32>
    %129 = arith.addf %127, %128 : vector<2x1xf32>
    %c0_28 = arith.constant 0 : index
    %c3_29 = arith.constant 3 : index
    %130 = vector.load %arg0[%c0_28, %c3_29] : memref<2x8xf32, #tpu.memory_space<vmem>>, vector<2x1xf32>
    %131 = vector.broadcast %130 : vector<2x1xf32> to vector<2x96xf32>
    %132 = vector.broadcast %1 : vector<1x96xf32> to vector<2x96xf32>
    %133 = arith.mulf %131, %132 : vector<2x96xf32>
    %134 = vector.broadcast %2 : vector<1x96xf32> to vector<2x96xf32>
    %135 = arith.addf %133, %134 : vector<2x96xf32>
    %cst_30 = arith.constant dense<0.000000e+00> : vector<2x96xf32>
    %136 = tpu.matmul %123, %0, %cst_30 {dimension_numbers = #tpu.dot_dimension_numbers<[1], [0], [0], [1], [0, 0, 1, 1], [], []>} : vector<2x32xf32>, vector<32x96xf32>, vector<2x96xf32> -> vector<2x96xf32>
    %137 = vector.extract_strided_slice %135 {offsets = [0, 0], sizes = [2, 32], strides = [1, 1]} : vector<2x96xf32> to vector<2x32xf32>
    %138 = vector.extract_strided_slice %136 {offsets = [0, 0], sizes = [2, 32], strides = [1, 1]} : vector<2x96xf32> to vector<2x32xf32>
    %139 = arith.addf %137, %138 : vector<2x32xf32>
    %140 = arith.negf %139 : vector<2x32xf32>
    %141 = math.exp %140 : vector<2x32xf32>
    %cst_31 = arith.constant 1.000000e+00 : f32
    %142 = vector.broadcast %cst_31 : f32 to vector<2x32xf32>
    %143 = arith.addf %142, %141 : vector<2x32xf32>
    %144 = arith.divf %142, %143 : vector<2x32xf32>
    %145 = vector.extract_strided_slice %135 {offsets = [0, 32], sizes = [2, 32], strides = [1, 1]} : vector<2x96xf32> to vector<2x32xf32>
    %146 = vector.extract_strided_slice %136 {offsets = [0, 32], sizes = [2, 32], strides = [1, 1]} : vector<2x96xf32> to vector<2x32xf32>
    %147 = arith.addf %145, %146 : vector<2x32xf32>
    %148 = arith.negf %147 : vector<2x32xf32>
    %149 = math.exp %148 : vector<2x32xf32>
    %cst_32 = arith.constant 1.000000e+00 : f32
    %150 = vector.broadcast %cst_32 : f32 to vector<2x32xf32>
    %151 = arith.addf %150, %149 : vector<2x32xf32>
    %152 = arith.divf %150, %151 : vector<2x32xf32>
    %153 = vector.extract_strided_slice %135 {offsets = [0, 64], sizes = [2, 32], strides = [1, 1]} : vector<2x96xf32> to vector<2x32xf32>
    %154 = vector.extract_strided_slice %136 {offsets = [0, 64], sizes = [2, 32], strides = [1, 1]} : vector<2x96xf32> to vector<2x32xf32>
    %155 = vector.broadcast %3 : vector<1x32xf32> to vector<2x32xf32>
    %156 = arith.addf %154, %155 : vector<2x32xf32>
    %157 = arith.mulf %144, %156 : vector<2x32xf32>
    %158 = arith.addf %153, %157 : vector<2x32xf32>
    %159 = math.tanh %158 : vector<2x32xf32>
    %cst_33 = arith.constant 1.000000e+00 : f32
    %160 = vector.broadcast %cst_33 : f32 to vector<2x32xf32>
    %161 = arith.subf %160, %152 : vector<2x32xf32>
    %162 = arith.mulf %161, %159 : vector<2x32xf32>
    %163 = arith.mulf %152, %123 : vector<2x32xf32>
    %164 = arith.addf %162, %163 : vector<2x32xf32>
    %165 = vector.broadcast %4 : vector<1x32xf32> to vector<2x32xf32>
    %166 = arith.mulf %164, %165 : vector<2x32xf32>
    %cst_34 = arith.constant dense<0.000000e+00> : vector<2xf32>
    %167 = vector.multi_reduction <add>, %166, %cst_34 [1] : vector<2x32xf32> to vector<2xf32>
    %168 = vector.shape_cast %167 : vector<2xf32> to vector<2x1xf32>
    %169 = vector.broadcast %5 : vector<1x1xf32> to vector<2x1xf32>
    %170 = arith.addf %168, %169 : vector<2x1xf32>
    %c0_35 = arith.constant 0 : index
    %c4 = arith.constant 4 : index
    %171 = vector.load %arg0[%c0_35, %c4] : memref<2x8xf32, #tpu.memory_space<vmem>>, vector<2x1xf32>
    %172 = vector.broadcast %171 : vector<2x1xf32> to vector<2x96xf32>
    %173 = vector.broadcast %1 : vector<1x96xf32> to vector<2x96xf32>
    %174 = arith.mulf %172, %173 : vector<2x96xf32>
    %175 = vector.broadcast %2 : vector<1x96xf32> to vector<2x96xf32>
    %176 = arith.addf %174, %175 : vector<2x96xf32>
    %cst_36 = arith.constant dense<0.000000e+00> : vector<2x96xf32>
    %177 = tpu.matmul %164, %0, %cst_36 {dimension_numbers = #tpu.dot_dimension_numbers<[1], [0], [0], [1], [0, 0, 1, 1], [], []>} : vector<2x32xf32>, vector<32x96xf32>, vector<2x96xf32> -> vector<2x96xf32>
    %178 = vector.extract_strided_slice %176 {offsets = [0, 0], sizes = [2, 32], strides = [1, 1]} : vector<2x96xf32> to vector<2x32xf32>
    %179 = vector.extract_strided_slice %177 {offsets = [0, 0], sizes = [2, 32], strides = [1, 1]} : vector<2x96xf32> to vector<2x32xf32>
    %180 = arith.addf %178, %179 : vector<2x32xf32>
    %181 = arith.negf %180 : vector<2x32xf32>
    %182 = math.exp %181 : vector<2x32xf32>
    %cst_37 = arith.constant 1.000000e+00 : f32
    %183 = vector.broadcast %cst_37 : f32 to vector<2x32xf32>
    %184 = arith.addf %183, %182 : vector<2x32xf32>
    %185 = arith.divf %183, %184 : vector<2x32xf32>
    %186 = vector.extract_strided_slice %176 {offsets = [0, 32], sizes = [2, 32], strides = [1, 1]} : vector<2x96xf32> to vector<2x32xf32>
    %187 = vector.extract_strided_slice %177 {offsets = [0, 32], sizes = [2, 32], strides = [1, 1]} : vector<2x96xf32> to vector<2x32xf32>
    %188 = arith.addf %186, %187 : vector<2x32xf32>
    %189 = arith.negf %188 : vector<2x32xf32>
    %190 = math.exp %189 : vector<2x32xf32>
    %cst_38 = arith.constant 1.000000e+00 : f32
    %191 = vector.broadcast %cst_38 : f32 to vector<2x32xf32>
    %192 = arith.addf %191, %190 : vector<2x32xf32>
    %193 = arith.divf %191, %192 : vector<2x32xf32>
    %194 = vector.extract_strided_slice %176 {offsets = [0, 64], sizes = [2, 32], strides = [1, 1]} : vector<2x96xf32> to vector<2x32xf32>
    %195 = vector.extract_strided_slice %177 {offsets = [0, 64], sizes = [2, 32], strides = [1, 1]} : vector<2x96xf32> to vector<2x32xf32>
    %196 = vector.broadcast %3 : vector<1x32xf32> to vector<2x32xf32>
    %197 = arith.addf %195, %196 : vector<2x32xf32>
    %198 = arith.mulf %185, %197 : vector<2x32xf32>
    %199 = arith.addf %194, %198 : vector<2x32xf32>
    %200 = math.tanh %199 : vector<2x32xf32>
    %cst_39 = arith.constant 1.000000e+00 : f32
    %201 = vector.broadcast %cst_39 : f32 to vector<2x32xf32>
    %202 = arith.subf %201, %193 : vector<2x32xf32>
    %203 = arith.mulf %202, %200 : vector<2x32xf32>
    %204 = arith.mulf %193, %164 : vector<2x32xf32>
    %205 = arith.addf %203, %204 : vector<2x32xf32>
    %206 = vector.broadcast %4 : vector<1x32xf32> to vector<2x32xf32>
    %207 = arith.mulf %205, %206 : vector<2x32xf32>
    %cst_40 = arith.constant dense<0.000000e+00> : vector<2xf32>
    %208 = vector.multi_reduction <add>, %207, %cst_40 [1] : vector<2x32xf32> to vector<2xf32>
    %209 = vector.shape_cast %208 : vector<2xf32> to vector<2x1xf32>
    %210 = vector.broadcast %5 : vector<1x1xf32> to vector<2x1xf32>
    %211 = arith.addf %209, %210 : vector<2x1xf32>
    %c0_41 = arith.constant 0 : index
    %c5 = arith.constant 5 : index
    %212 = vector.load %arg0[%c0_41, %c5] : memref<2x8xf32, #tpu.memory_space<vmem>>, vector<2x1xf32>
    %213 = vector.broadcast %212 : vector<2x1xf32> to vector<2x96xf32>
    %214 = vector.broadcast %1 : vector<1x96xf32> to vector<2x96xf32>
    %215 = arith.mulf %213, %214 : vector<2x96xf32>
    %216 = vector.broadcast %2 : vector<1x96xf32> to vector<2x96xf32>
    %217 = arith.addf %215, %216 : vector<2x96xf32>
    %cst_42 = arith.constant dense<0.000000e+00> : vector<2x96xf32>
    %218 = tpu.matmul %205, %0, %cst_42 {dimension_numbers = #tpu.dot_dimension_numbers<[1], [0], [0], [1], [0, 0, 1, 1], [], []>} : vector<2x32xf32>, vector<32x96xf32>, vector<2x96xf32> -> vector<2x96xf32>
    %219 = vector.extract_strided_slice %217 {offsets = [0, 0], sizes = [2, 32], strides = [1, 1]} : vector<2x96xf32> to vector<2x32xf32>
    %220 = vector.extract_strided_slice %218 {offsets = [0, 0], sizes = [2, 32], strides = [1, 1]} : vector<2x96xf32> to vector<2x32xf32>
    %221 = arith.addf %219, %220 : vector<2x32xf32>
    %222 = arith.negf %221 : vector<2x32xf32>
    %223 = math.exp %222 : vector<2x32xf32>
    %cst_43 = arith.constant 1.000000e+00 : f32
    %224 = vector.broadcast %cst_43 : f32 to vector<2x32xf32>
    %225 = arith.addf %224, %223 : vector<2x32xf32>
    %226 = arith.divf %224, %225 : vector<2x32xf32>
    %227 = vector.extract_strided_slice %217 {offsets = [0, 32], sizes = [2, 32], strides = [1, 1]} : vector<2x96xf32> to vector<2x32xf32>
    %228 = vector.extract_strided_slice %218 {offsets = [0, 32], sizes = [2, 32], strides = [1, 1]} : vector<2x96xf32> to vector<2x32xf32>
    %229 = arith.addf %227, %228 : vector<2x32xf32>
    %230 = arith.negf %229 : vector<2x32xf32>
    %231 = math.exp %230 : vector<2x32xf32>
    %cst_44 = arith.constant 1.000000e+00 : f32
    %232 = vector.broadcast %cst_44 : f32 to vector<2x32xf32>
    %233 = arith.addf %232, %231 : vector<2x32xf32>
    %234 = arith.divf %232, %233 : vector<2x32xf32>
    %235 = vector.extract_strided_slice %217 {offsets = [0, 64], sizes = [2, 32], strides = [1, 1]} : vector<2x96xf32> to vector<2x32xf32>
    %236 = vector.extract_strided_slice %218 {offsets = [0, 64], sizes = [2, 32], strides = [1, 1]} : vector<2x96xf32> to vector<2x32xf32>
    %237 = vector.broadcast %3 : vector<1x32xf32> to vector<2x32xf32>
    %238 = arith.addf %236, %237 : vector<2x32xf32>
    %239 = arith.mulf %226, %238 : vector<2x32xf32>
    %240 = arith.addf %235, %239 : vector<2x32xf32>
    %241 = math.tanh %240 : vector<2x32xf32>
    %cst_45 = arith.constant 1.000000e+00 : f32
    %242 = vector.broadcast %cst_45 : f32 to vector<2x32xf32>
    %243 = arith.subf %242, %234 : vector<2x32xf32>
    %244 = arith.mulf %243, %241 : vector<2x32xf32>
    %245 = arith.mulf %234, %205 : vector<2x32xf32>
    %246 = arith.addf %244, %245 : vector<2x32xf32>
    %247 = vector.broadcast %4 : vector<1x32xf32> to vector<2x32xf32>
    %248 = arith.mulf %246, %247 : vector<2x32xf32>
    %cst_46 = arith.constant dense<0.000000e+00> : vector<2xf32>
    %249 = vector.multi_reduction <add>, %248, %cst_46 [1] : vector<2x32xf32> to vector<2xf32>
    %250 = vector.shape_cast %249 : vector<2xf32> to vector<2x1xf32>
    %251 = vector.broadcast %5 : vector<1x1xf32> to vector<2x1xf32>
    %252 = arith.addf %250, %251 : vector<2x1xf32>
    %c0_47 = arith.constant 0 : index
    %c6 = arith.constant 6 : index
    %253 = vector.load %arg0[%c0_47, %c6] : memref<2x8xf32, #tpu.memory_space<vmem>>, vector<2x1xf32>
    %254 = vector.broadcast %253 : vector<2x1xf32> to vector<2x96xf32>
    %255 = vector.broadcast %1 : vector<1x96xf32> to vector<2x96xf32>
    %256 = arith.mulf %254, %255 : vector<2x96xf32>
    %257 = vector.broadcast %2 : vector<1x96xf32> to vector<2x96xf32>
    %258 = arith.addf %256, %257 : vector<2x96xf32>
    %cst_48 = arith.constant dense<0.000000e+00> : vector<2x96xf32>
    %259 = tpu.matmul %246, %0, %cst_48 {dimension_numbers = #tpu.dot_dimension_numbers<[1], [0], [0], [1], [0, 0, 1, 1], [], []>} : vector<2x32xf32>, vector<32x96xf32>, vector<2x96xf32> -> vector<2x96xf32>
    %260 = vector.extract_strided_slice %258 {offsets = [0, 0], sizes = [2, 32], strides = [1, 1]} : vector<2x96xf32> to vector<2x32xf32>
    %261 = vector.extract_strided_slice %259 {offsets = [0, 0], sizes = [2, 32], strides = [1, 1]} : vector<2x96xf32> to vector<2x32xf32>
    %262 = arith.addf %260, %261 : vector<2x32xf32>
    %263 = arith.negf %262 : vector<2x32xf32>
    %264 = math.exp %263 : vector<2x32xf32>
    %cst_49 = arith.constant 1.000000e+00 : f32
    %265 = vector.broadcast %cst_49 : f32 to vector<2x32xf32>
    %266 = arith.addf %265, %264 : vector<2x32xf32>
    %267 = arith.divf %265, %266 : vector<2x32xf32>
    %268 = vector.extract_strided_slice %258 {offsets = [0, 32], sizes = [2, 32], strides = [1, 1]} : vector<2x96xf32> to vector<2x32xf32>
    %269 = vector.extract_strided_slice %259 {offsets = [0, 32], sizes = [2, 32], strides = [1, 1]} : vector<2x96xf32> to vector<2x32xf32>
    %270 = arith.addf %268, %269 : vector<2x32xf32>
    %271 = arith.negf %270 : vector<2x32xf32>
    %272 = math.exp %271 : vector<2x32xf32>
    %cst_50 = arith.constant 1.000000e+00 : f32
    %273 = vector.broadcast %cst_50 : f32 to vector<2x32xf32>
    %274 = arith.addf %273, %272 : vector<2x32xf32>
    %275 = arith.divf %273, %274 : vector<2x32xf32>
    %276 = vector.extract_strided_slice %258 {offsets = [0, 64], sizes = [2, 32], strides = [1, 1]} : vector<2x96xf32> to vector<2x32xf32>
    %277 = vector.extract_strided_slice %259 {offsets = [0, 64], sizes = [2, 32], strides = [1, 1]} : vector<2x96xf32> to vector<2x32xf32>
    %278 = vector.broadcast %3 : vector<1x32xf32> to vector<2x32xf32>
    %279 = arith.addf %277, %278 : vector<2x32xf32>
    %280 = arith.mulf %267, %279 : vector<2x32xf32>
    %281 = arith.addf %276, %280 : vector<2x32xf32>
    %282 = math.tanh %281 : vector<2x32xf32>
    %cst_51 = arith.constant 1.000000e+00 : f32
    %283 = vector.broadcast %cst_51 : f32 to vector<2x32xf32>
    %284 = arith.subf %283, %275 : vector<2x32xf32>
    %285 = arith.mulf %284, %282 : vector<2x32xf32>
    %286 = arith.mulf %275, %246 : vector<2x32xf32>
    %287 = arith.addf %285, %286 : vector<2x32xf32>
    %288 = vector.broadcast %4 : vector<1x32xf32> to vector<2x32xf32>
    %289 = arith.mulf %287, %288 : vector<2x32xf32>
    %cst_52 = arith.constant dense<0.000000e+00> : vector<2xf32>
    %290 = vector.multi_reduction <add>, %289, %cst_52 [1] : vector<2x32xf32> to vector<2xf32>
    %291 = vector.shape_cast %290 : vector<2xf32> to vector<2x1xf32>
    %292 = vector.broadcast %5 : vector<1x1xf32> to vector<2x1xf32>
    %293 = arith.addf %291, %292 : vector<2x1xf32>
    %c0_53 = arith.constant 0 : index
    %c7 = arith.constant 7 : index
    %294 = vector.load %arg0[%c0_53, %c7] : memref<2x8xf32, #tpu.memory_space<vmem>>, vector<2x1xf32>
    %295 = vector.broadcast %294 : vector<2x1xf32> to vector<2x96xf32>
    %296 = vector.broadcast %1 : vector<1x96xf32> to vector<2x96xf32>
    %297 = arith.mulf %295, %296 : vector<2x96xf32>
    %298 = vector.broadcast %2 : vector<1x96xf32> to vector<2x96xf32>
    %299 = arith.addf %297, %298 : vector<2x96xf32>
    %cst_54 = arith.constant dense<0.000000e+00> : vector<2x96xf32>
    %300 = tpu.matmul %287, %0, %cst_54 {dimension_numbers = #tpu.dot_dimension_numbers<[1], [0], [0], [1], [0, 0, 1, 1], [], []>} : vector<2x32xf32>, vector<32x96xf32>, vector<2x96xf32> -> vector<2x96xf32>
    %301 = vector.extract_strided_slice %299 {offsets = [0, 0], sizes = [2, 32], strides = [1, 1]} : vector<2x96xf32> to vector<2x32xf32>
    %302 = vector.extract_strided_slice %300 {offsets = [0, 0], sizes = [2, 32], strides = [1, 1]} : vector<2x96xf32> to vector<2x32xf32>
    %303 = arith.addf %301, %302 : vector<2x32xf32>
    %304 = arith.negf %303 : vector<2x32xf32>
    %305 = math.exp %304 : vector<2x32xf32>
    %cst_55 = arith.constant 1.000000e+00 : f32
    %306 = vector.broadcast %cst_55 : f32 to vector<2x32xf32>
    %307 = arith.addf %306, %305 : vector<2x32xf32>
    %308 = arith.divf %306, %307 : vector<2x32xf32>
    %309 = vector.extract_strided_slice %299 {offsets = [0, 32], sizes = [2, 32], strides = [1, 1]} : vector<2x96xf32> to vector<2x32xf32>
    %310 = vector.extract_strided_slice %300 {offsets = [0, 32], sizes = [2, 32], strides = [1, 1]} : vector<2x96xf32> to vector<2x32xf32>
    %311 = arith.addf %309, %310 : vector<2x32xf32>
    %312 = arith.negf %311 : vector<2x32xf32>
    %313 = math.exp %312 : vector<2x32xf32>
    %cst_56 = arith.constant 1.000000e+00 : f32
    %314 = vector.broadcast %cst_56 : f32 to vector<2x32xf32>
    %315 = arith.addf %314, %313 : vector<2x32xf32>
    %316 = arith.divf %314, %315 : vector<2x32xf32>
    %317 = vector.extract_strided_slice %299 {offsets = [0, 64], sizes = [2, 32], strides = [1, 1]} : vector<2x96xf32> to vector<2x32xf32>
    %318 = vector.extract_strided_slice %300 {offsets = [0, 64], sizes = [2, 32], strides = [1, 1]} : vector<2x96xf32> to vector<2x32xf32>
    %319 = vector.broadcast %3 : vector<1x32xf32> to vector<2x32xf32>
    %320 = arith.addf %318, %319 : vector<2x32xf32>
    %321 = arith.mulf %308, %320 : vector<2x32xf32>
    %322 = arith.addf %317, %321 : vector<2x32xf32>
    %323 = math.tanh %322 : vector<2x32xf32>
    %cst_57 = arith.constant 1.000000e+00 : f32
    %324 = vector.broadcast %cst_57 : f32 to vector<2x32xf32>
    %325 = arith.subf %324, %316 : vector<2x32xf32>
    %326 = arith.mulf %325, %323 : vector<2x32xf32>
    %327 = arith.mulf %316, %287 : vector<2x32xf32>
    %328 = arith.addf %326, %327 : vector<2x32xf32>
    %329 = vector.broadcast %4 : vector<1x32xf32> to vector<2x32xf32>
    %330 = arith.mulf %328, %329 : vector<2x32xf32>
    %cst_58 = arith.constant dense<0.000000e+00> : vector<2xf32>
    %331 = vector.multi_reduction <add>, %330, %cst_58 [1] : vector<2x32xf32> to vector<2xf32>
    %332 = vector.shape_cast %331 : vector<2xf32> to vector<2x1xf32>
    %333 = vector.broadcast %5 : vector<1x1xf32> to vector<2x1xf32>
    %334 = arith.addf %332, %333 : vector<2x1xf32>
    %c0_59 = arith.constant 0 : index
    %c0_60 = arith.constant 0 : index
    %335 = vector.load %arg5[%c0_59, %c0_60] : memref<2x32xf32, #tpu.memory_space<vmem>>, vector<2x32xf32>
    tpu.vector_store %arg5[%c0_59, %c0_60], %328 {strides = array<i32>} : memref<2x32xf32, #tpu.memory_space<vmem>>, vector<2x32xf32>,
    %336 = tpu.concatenate %47, %88, %129, %170, %211, %252, %293, %334 in 1 : vector<2x1xf32>, vector<2x1xf32>, vector<2x1xf32>, vector<2x1xf32>, vector<2x1xf32>, vector<2x1xf32>, vector<2x1xf32>, vector<2x1xf32> -> vector<2x8xf32>
    %c0_61 = arith.constant 0 : index
    %c0_62 = arith.constant 0 : index
    %337 = vector.load %arg4[%c0_61, %c0_62] : memref<2x8xf32, #tpu.memory_space<vmem>>, vector<2x8xf32>
    tpu.vector_store %arg4[%c0_61, %c0_62], %336 {strides = array<i32>} : memref<2x8xf32, #tpu.memory_space<vmem>>, vector<2x8xf32>,
    return
  }
}

</mosaic_0001>

<bundles_post_ra>
// kernel: gru_model_forward.1
= control target key start
LH: loop header
LB: loop body
LE: loop exit
PB: predicated region body
PF: predicated region fallthrough
CT: control target
= control target key end

     0   :  { %11 = vsyncpa [#allocation3], 0  ;;  %s1740_s0 = inlined_call_operand.vmem [shape: f32[2,8], index: 0, kind: input, shape index: {}]   ;;  %s1741_s1 = inlined_call_operand.vmem [shape: f32[2,32], index: 1, kind: input, shape index: {}]   ;;  %s1742_s2 = inlined_call_operand.hbm [shape: f32[32,96], index: 2, kind: input, shape index: {}]   ;;  %s1743_s3 = inlined_call_operand.vmem [shape: f32[4,96], index: 3, kind: input, shape index: {}]   ;;  %s1744_s4 = inlined_call_operand.hbm [shape: f32[2,8], index: 4, kind: output, shape index: {0}]   ;;  %s1745_s5 = inlined_call_operand.hbm [shape: f32[2,32], index: 5, kind: output, shape index: {1}]  }
   0x1   :  { %12 = vsyncpa [#allocation4], 0 }
   0x2   :  { %13 = vsyncpa [#allocation7], 0  ;;  %s1437_s18 = smov [#allocation2]   ;;  %s1365_s22 = scalar_lea.hbm %s1742_s2, 512 }
   0x3   :  { %s23_s19 = sshll.u32 %s1437_s18, 4  ;;  %p1366_p0 = scmp.ne.s32.totalorder %s1742_s2, %s1365_s22  ;;  %s24_s19 = int_to_ptr.vmem [resolvable:$true] %s23_s19 }
   0x4   :  { %p1369_p1 = scmp.lt.u32.totalorder %s1365_s22, %s1742_s2 }
   0x6   :  { %p1371_p2 = pnand %p1369_p1, %p1366_p0 }
   0x8   :  { %1374 = shalt.err (!%p1371_p2)
}
   0x9   :  { %s1375_s27 = scalar_lea.vmem %s24_s19, 512  ;;  %p1380_p4 = scmp.lt.s32.totalorder %s24_s19, %s24_s19 }
   0xa   :  { %p1376_p3 = scmp.ne.s32.totalorder %s24_s19, %s1375_s27  ;;  %p1381_p5 = scmp.lt.s32.totalorder %s1375_s27, %s1375_s27 }
   0xc   :  { %p1382_p6 = por %p1381_p5, %p1380_p4 }
   0xe   :  { %p1383_p7 = pnand %p1382_p6, %p1376_p3 }
  0x10   :  { %1386 = shalt.err (!%p1383_p7)
}
  0x11   :  { %s1438_s28 = smov 128   ;;  %s1439_s29 = smov 8  }
  0x12   :  { %29 = dma.hbm_to_vmem [thread:$0]  %s1742_s2, 512, %s24_s19, [#allocation3], %s1438_s28, %s1438_s28, %s1439_s29  }
  0x13   :  { %1431 = dma.done.wait [#allocation3], 512  }
  0x14   :  { %1432 = vsyncadd [#allocation3], 4294966784  ;;  %v1440_v0 = vmov 0.0|0.0   ;;  %vm1441_vm0 = vmmov 0   ;;  %v1442_v1 = vmov 0.0   ;;  %v1443_v2 = vmov 0  }
  0x15   :  { %1235 = vmatprep.subr.bf16.mxu0 %v1440_v0  ;;  %1155 = vmatprep.mubr.msk.f32.mxu0 %vm1441_vm0, %v1442_v1  ;;  %v35_v3 = vld [vmem:[#allocation2] sm:$0xff]  ;;  %v36_v4 = vld [vmem:[#allocation2 + $0x8] sm:$0xff]  ;;  %v37_v5 = vld [vmem:[#allocation2 + $0x10] sm:$0xff]  ;;  %vm60_vm1 = vcmask 261120   ;;  %s1444_s10 = smov 64   ;;  %s1445_s11 = smov 32  }
  0x16   :  { %1309 = vset.pattern.permute.xlu0 %v1443_v2  ;;  %1241 = vmatprep.subr.bf16.mxu1 %v1440_v0  ;;  %v1511_v6 = vpack.c.bf16 %v36_v4, %v35_v3  ;;  %v38_v7 = vld [vmem:[#allocation2 + $0x18] sm:$0xff]  ;;  %v1516_v8 = vld [vmem:[%s1740_s0] sm:$0x3]  ;;  %v1542_v11 = vld [vmem:[%s1743_s3 + $0x2] ss:$0 sm:$0xff]  ;;  %s1446_s16 = smov 96  }
  0x17   :  { %1166 = vmatprep.mubr.msk.f32.mxu1 %vm1441_vm0, %v1442_v1  ;;  %47 = vperm.xlu0 %1309, %v1516_v8   ;;  %v1520_v9 = vpack.c.bf16 %v38_v7, %v37_v5  ;;  %v43_v10 = vld [vmem:[%s1741_s1] sm:$0x3]  ;;  %v1447_v30 = vmov 1   ;;  %v1448_v54 = vmov 2   ;;  %vm181_vm2 = vcmask 254976   ;;  %s1455_s19 = smov 98  }
  0x18   :  { %1237 = vmatpush3.bf16.msra.mxu0 %v1511_v6  ;;  %1243 = vmatpush3.bf16.msra.mxu1 %v1511_v6  ;;  %v1550_v16 = vld [vmem:[%s1743_s3] ss:$0 sm:$0xff]  ;;  %v1556_v18 = vld [vmem:[%s1743_s3 + $0x1] ss:$0 sm:$0xff]  ;;  %s1456_s20 = smov 99   ;;  %s1457_s21 = smov 100  }
  0x19   :  { %1238 = vmatprep.subr.bf16.mxu0 %v1440_v0  ;;  %1244 = vmatprep.subr.bf16.mxu1 %v1440_v0  ;;  %s1458_s22 = smov [#allocation6]   ;;  %s1459_s24 = smov 102  }
  0x1a   :  { %s1074_s23 = sshll.u32 %s1458_s22, 4  ;;  %s1460_s25 = smov 101   ;;  %s1075_s23 = int_to_ptr.vmem [resolvable:$true] %s1074_s23 }
  0x1b   :  { %1310 = vset.pattern.permute.xlu0 %v1447_v30  ;;  %s1387_s26 = scalar_lea.vmem %s1075_s23, 32  ;;  %p1392_p9 = scmp.lt.s32.totalorder %s1075_s23, %s1075_s23 }
  0x1c   :  { %1240 = vmatpush3.bf16.msra.mxu0 %v1520_v9  ;;  %1246 = vmatpush3.bf16.msra.mxu1 %v1520_v9  ;;  %p1388_p8 = scmp.ne.s32.totalorder %s1075_s23, %s1387_s26  ;;  %p1393_p10 = scmp.lt.s32.totalorder %s1387_s26, %s1387_s26 }
  0x1d   :  { %1247 = vmatprep.subr.bf16.mxu0 %v1440_v0  ;;  %1253 = vmatprep.subr.bf16.mxu1 %v1440_v0 }
  0x1e   :  { %p1394_p11 = por %p1393_p10, %p1392_p9 }
  0x1f   :  { %1156 = vmatmul.mubr.msk.f32.vlgmr.msra.gmra.mrb[0].mxu0 %vm60_vm1, %v43_v10 }
  0x20   :  { %1249 = vmatpush3.bf16.msra.mxu0 %v1511_v6  ;;  %1177 = vmatprep.mubr.msk.f32.mxu0 %vm1441_vm0, %v1442_v1  ;;  %p1395_p12 = pnand %p1394_p11, %p1388_p8 }
  0x21   :  { %1250 = vmatprep.subr.bf16.mxu0 %v1440_v0 }
  0x24   :  { %1252 = vmatpush3.bf16.msra.mxu0 %v1520_v9 }
  0x25   :  { %1259 = vmatprep.subr.bf16.mxu0 %v1440_v0 }
  0x96   :  { %v48_v15 = vpop.permute.xlu0 %47 }
  0x97   :  { %v54_v17 = vmul.f32 %v1550_v16, %v48_v15 }
  0x99   :  { %v59_v19 = vadd.f32 %v1556_v18, %v54_v17 }
  0xf2   :  { %v130_v12 = vpop.f32.mrb[0].mxu0 }
  0xf3   :  { %v145_v13 = vadd.f32 %v1542_v11, %v130_v12  ;;  %v1157_v14 = vpop.f32.mrb[1].mxu0  ;;  %v134_v20 = vadd.f32 %v130_v12, %v59_v19 }
  0xf5   :  { %147 = vrot.lane.b32.xlu0 %v145_v13, %s1444_s10  ;;  %v1090_v21 = vmul.f32 -1.442695, %v134_v20 }
  0xf7   :  { %1317 = vpow2.f32 %v1090_v21  ;;  %v1449_v21 = vmov 3  }
  0xf9   :  { %163 = vrot.lane.b32.xlu0 %v43_v10, %s1445_s11 }
  0xfd   :  { %187 = vperm.xlu0 %1310, %v1516_v8  }
 0x101   :  { %v1318_v22 = vpop.eup %1317  ;;  %1311 = vset.pattern.permute.xlu0 %v1448_v54 }
 0x102   :  { %v138_v23 = vadd.f32 1.0, %v1318_v22 }
 0x104   :  { %1319 = vrcp.f32 %v138_v23 }
 0x10e   :  { %v1320_v24 = vpop.eup %1319 }
 0x10f   :  { %v157_v32 = vsub.f32 1.0, %v1320_v24 }
 0x167   :  { %v148_v25 = vpop.permute.xlu0 %147 }
 0x168   :  { %v150_v26 = vmul.f32 %v1320_v24, %v148_v25 }
 0x16a   :  { %152 = vrot.lane.b32.xlu1 %v150_v26, %s1444_s10 }
 0x16b   :  { %v164_v31 = vpop.permute.xlu0 %163 }
 0x16c   :  { %v166_v34 = vmul.f32 %v1320_v24, %v164_v31 }
 0x17c   :  { %v188_v41 = vpop.permute.xlu0 %187 }
 0x17d   :  { %v190_v42 = vmul.f32 %v1550_v16, %v188_v41 }
 0x17f   :  { %v191_v43 = vadd.f32 %v1556_v18, %v190_v42 }
 0x1dc   :  { %v153_v27 = vpop.permute.xlu1 %152 }
 0x1dd   :  { %v155_v28 = vadd.f32 %v153_v27, %v59_v19 }
 0x1df   :  { %1321 = vtanh.f32 %v155_v28 }
 0x1e9   :  { %v1322_v29 = vpop.eup %1321 }
 0x1ea   :  { %159 = vrot.lane.b32.xlu1 %v1322_v29, %s1446_s16 }
 0x25c   :  { %v160_v33 = vpop.permute.xlu1 %159 }
 0x25d   :  { %v162_v35 = vmul.f32 %v160_v33, %v157_v32 }
 0x25f   :  { %v1562_v36 = vadd.f32 %v166_v34, %v162_v35 }
 0x261   :  { %193 = vrot.lane.b32.xlu1 %v1562_v36, %s1446_s16 }
 0x2d3   :  { %v194_v37 = vpop.permute.xlu1 %193 }
 0x2d4   :  { %1167 = vmatmul.mubr.msk.f32.vlgmr.msra.gmra.mrb[0].mxu1 %vm60_vm1, %v194_v37 }
 0x2d5   :  { %1255 = vmatpush3.bf16.msra.mxu1 %v1511_v6  ;;  %1188 = vmatprep.mubr.msk.f32.mxu1 %vm1441_vm0, %v1442_v1 }
 0x2d6   :  { %1256 = vmatprep.subr.bf16.mxu1 %v1440_v0 }
 0x2d9   :  { %1258 = vmatpush3.bf16.msra.mxu1 %v1520_v9 }
 0x2da   :  { %1265 = vmatprep.subr.bf16.mxu1 %v1440_v0 }
 0x3a7   :  { %v263_v38 = vpop.f32.mrb[0].mxu1 }
 0x3a8   :  { %v274_v39 = vadd.f32 %v1542_v11, %v263_v38  ;;  %v1168_v40 = vpop.f32.mrb[1].mxu1  ;;  %v267_v44 = vadd.f32 %v263_v38, %v191_v43 }
 0x3aa   :  { %276 = vrot.lane.b32.xlu1 %v274_v39, %s1444_s10  ;;  %v1094_v45 = vmul.f32 -1.442695, %v267_v44 }
 0x3ac   :  { %1323 = vpow2.f32 %v1094_v45  ;;  %v1450_v45 = vmov 4  }
 0x3b6   :  { %v1324_v46 = vpop.eup %1323 }
 0x3b7   :  { %v271_v47 = vadd.f32 1.0, %v1324_v46 }
 0x3b9   :  { %1325 = vrcp.f32 %v271_v47 }
 0x3c3   :  { %v1326_v48 = vpop.eup %1325 }
 0x3c4   :  { %v286_v55 = vsub.f32 1.0, %v1326_v48  ;;  %v292_v57 = vmul.f32 %v1326_v48, %v1562_v36 }
 0x41c   :  { %v277_v49 = vpop.permute.xlu1 %276 }
 0x41d   :  { %v279_v50 = vmul.f32 %v1326_v48, %v277_v49 }
 0x41f   :  { %281 = vrot.lane.b32.xlu1 %v279_v50, %s1444_s10 }
 0x491   :  { %v282_v51 = vpop.permute.xlu1 %281 }
 0x492   :  { %v284_v52 = vadd.f32 %v282_v51, %v191_v43 }
 0x494   :  { %1327 = vtanh.f32 %v284_v52 }
 0x49e   :  { %v1328_v53 = vpop.eup %1327 }
 0x49f   :  { %288 = vrot.lane.b32.xlu0 %v1328_v53, %s1446_s16 }
 0x4a3   :  { %304 = vperm.xlu0 %1311, %v1516_v8  }
 0x4a7   :  { %1312 = vset.pattern.permute.xlu0 %v1449_v21 }
 0x511   :  { %v289_v56 = vpop.permute.xlu0 %288 }
 0x512   :  { %v291_v58 = vmul.f32 %v289_v56, %v286_v55 }
 0x514   :  { %v1581_v59 = vadd.f32 %v292_v57, %v291_v58 }
 0x516   :  { %310 = vrot.lane.b32.xlu1 %v1581_v59, %s1446_s16 }
 0x522   :  { %v305_v2 = vpop.permute.xlu0 %304 }
 0x523   :  { %v307_v3 = vmul.f32 %v1550_v16, %v305_v2 }
 0x525   :  { %v308_v4 = vadd.f32 %v1556_v18, %v307_v3 }
 0x588   :  { %v311_v60 = vpop.permute.xlu1 %310 }
 0x589   :  { %1178 = vmatmul.mubr.msk.f32.vlgmr.msra.gmra.mrb[2].mxu0 %vm60_vm1, %v311_v60 }
 0x58a   :  { %1261 = vmatpush3.bf16.msra.mxu0 %v1511_v6  ;;  %1199 = vmatprep.mubr.msk.f32.mxu0 %vm1441_vm0, %v1442_v1 }
 0x58b   :  { %1262 = vmatprep.subr.bf16.mxu0 %v1440_v0 }
 0x58e   :  { %1264 = vmatpush3.bf16.msra.mxu0 %v1520_v9 }
 0x58f   :  { %1271 = vmatprep.subr.bf16.mxu0 %v1440_v0 }
 0x65c   :  { %v380_v61 = vpop.f32.mrb[2].mxu0 }
 0x65d   :  { %v391_v62 = vadd.f32 %v1542_v11, %v380_v61  ;;  %v1179_v63 = vpop.f32.mrb[3].mxu0  ;;  %v384_v5 = vadd.f32 %v380_v61, %v308_v4 }
 0x65f   :  { %393 = vrot.lane.b32.xlu1 %v391_v62, %s1444_s10  ;;  %v1096_v7 = vmul.f32 -1.442695, %v384_v5 }
 0x661   :  { %1329 = vpow2.f32 %v1096_v7 }
 0x66b   :  { %v1330_v10 = vpop.eup %1329 }
 0x66c   :  { %v388_v12 = vadd.f32 1.0, %v1330_v10  ;;  %v1451_v10 = vmov 5  }
 0x66e   :  { %1331 = vrcp.f32 %v388_v12 }
 0x678   :  { %v1332_v13 = vpop.eup %1331 }
 0x679   :  { %v403_v22 = vsub.f32 1.0, %v1332_v13  ;;  %v409_v24 = vmul.f32 %v1332_v13, %v1581_v59 }
 0x6d1   :  { %v394_v14 = vpop.permute.xlu1 %393 }
 0x6d2   :  { %v396_v15 = vmul.f32 %v1332_v13, %v394_v14 }
 0x6d4   :  { %398 = vrot.lane.b32.xlu1 %v396_v15, %s1444_s10 }
 0x746   :  { %v399_v17 = vpop.permute.xlu1 %398 }
 0x747   :  { %v401_v19 = vadd.f32 %v399_v17, %v308_v4 }
 0x749   :  { %1333 = vtanh.f32 %v401_v19 }
 0x753   :  { %v1334_v20 = vpop.eup %1333 }
 0x754   :  { %405 = vrot.lane.b32.xlu0 %v1334_v20, %s1446_s16 }
 0x758   :  { %421 = vperm.xlu0 %1312, %v1516_v8  }
 0x75c   :  { %1313 = vset.pattern.permute.xlu0 %v1450_v45 }
 0x7c6   :  { %v406_v23 = vpop.permute.xlu0 %405 }
 0x7c7   :  { %v408_v25 = vmul.f32 %v406_v23, %v403_v22 }
 0x7c9   :  { %v1600_v26 = vadd.f32 %v409_v24, %v408_v25 }
 0x7cb   :  { %427 = vrot.lane.b32.xlu1 %v1600_v26, %s1446_s16 }
 0x7d7   :  { %v422_v31 = vpop.permute.xlu0 %421 }
 0x7d8   :  { %v424_v32 = vmul.f32 %v1550_v16, %v422_v31 }
 0x7da   :  { %v425_v33 = vadd.f32 %v1556_v18, %v424_v32 }
 0x83d   :  { %v428_v27 = vpop.permute.xlu1 %427 }
 0x83e   :  { %1189 = vmatmul.mubr.msk.f32.vlgmr.msra.gmra.mrb[2].mxu1 %vm60_vm1, %v428_v27 }
 0x83f   :  { %1267 = vmatpush3.bf16.msra.mxu1 %v1511_v6  ;;  %1210 = vmatprep.mubr.msk.f32.mxu1 %vm1441_vm0, %v1442_v1 }
 0x840   :  { %1268 = vmatprep.subr.bf16.mxu1 %v1440_v0 }
 0x843   :  { %1270 = vmatpush3.bf16.msra.mxu1 %v1520_v9 }
 0x844   :  { %1277 = vmatprep.subr.bf16.mxu1 %v1440_v0 }
 0x911   :  { %v497_v28 = vpop.f32.mrb[2].mxu1 }
 0x912   :  { %v508_v29 = vadd.f32 %v1542_v11, %v497_v28  ;;  %v1190_v30 = vpop.f32.mrb[3].mxu1  ;;  %v501_v34 = vadd.f32 %v497_v28, %v425_v33 }
 0x914   :  { %510 = vrot.lane.b32.xlu1 %v508_v29, %s1444_s10  ;;  %v1098_v35 = vmul.f32 -1.442695, %v501_v34 }
 0x916   :  { %1335 = vpow2.f32 %v1098_v35 }
 0x920   :  { %v1336_v37 = vpop.eup %1335 }
 0x921   :  { %v505_v38 = vadd.f32 1.0, %v1336_v37 }
 0x923   :  { %1337 = vrcp.f32 %v505_v38 }
 0x92d   :  { %v1338_v39 = vpop.eup %1337 }
 0x92e   :  { %v520_v46 = vsub.f32 1.0, %v1338_v39  ;;  %v526_v48 = vmul.f32 %v1338_v39, %v1600_v26 }
 0x986   :  { %v511_v40 = vpop.permute.xlu1 %510 }
 0x987   :  { %v513_v41 = vmul.f32 %v1338_v39, %v511_v40 }
 0x989   :  { %515 = vrot.lane.b32.xlu1 %v513_v41, %s1444_s10 }
 0x9fb   :  { %v516_v42 = vpop.permute.xlu1 %515 }
 0x9fc   :  { %v518_v43 = vadd.f32 %v516_v42, %v425_v33  ;;  %v1452_v33 = vmov 6  }
 0x9fe   :  { %1339 = vtanh.f32 %v518_v43 }
 0xa08   :  { %v1340_v44 = vpop.eup %1339 }
 0xa09   :  { %522 = vrot.lane.b32.xlu0 %v1340_v44, %s1446_s16 }
 0xa0d   :  { %538 = vperm.xlu0 %1313, %v1516_v8  }
 0xa11   :  { %1314 = vset.pattern.permute.xlu0 %v1451_v10 }
 0xa7b   :  { %v523_v47 = vpop.permute.xlu0 %522 }
 0xa7c   :  { %v525_v49 = vmul.f32 %v523_v47, %v520_v46 }
 0xa7e   :  { %v1619_v50 = vadd.f32 %v526_v48, %v525_v49 }
 0xa80   :  { %544 = vrot.lane.b32.xlu1 %v1619_v50, %s1446_s16 }
 0xa8c   :  { %v539_v55 = vpop.permute.xlu0 %538 }
 0xa8d   :  { %v541_v56 = vmul.f32 %v1550_v16, %v539_v55  ;;  %v1453_v55 = vmov 7  }
 0xa8f   :  { %v542_v57 = vadd.f32 %v1556_v18, %v541_v56 }
 0xaf2   :  { %v545_v51 = vpop.permute.xlu1 %544 }
 0xaf3   :  { %1200 = vmatmul.mubr.msk.f32.vlgmr.msra.gmra.mrb[4].mxu0 %vm60_vm1, %v545_v51 }
 0xaf4   :  { %1273 = vmatpush3.bf16.msra.mxu0 %v1511_v6  ;;  %1221 = vmatprep.mubr.msk.f32.mxu0 %vm1441_vm0, %v1442_v1 }
 0xaf5   :  { %1274 = vmatprep.subr.bf16.mxu0 %v1440_v0 }
 0xaf8   :  { %1276 = vmatpush3.bf16.msra.mxu0 %v1520_v9 }
 0xbc6   :  { %v614_v52 = vpop.f32.mrb[4].mxu0 }
 0xbc7   :  { %v625_v53 = vadd.f32 %v1542_v11, %v614_v52  ;;  %v1201_v54 = vpop.f32.mrb[5].mxu0  ;;  %v618_v58 = vadd.f32 %v614_v52, %v542_v57 }
 0xbc9   :  { %627 = vrot.lane.b32.xlu1 %v625_v53, %s1444_s10  ;;  %v1100_v60 = vmul.f32 -1.442695, %v618_v58 }
 0xbcb   :  { %1341 = vpow2.f32 %v1100_v60  ;;  %v1670_v60 = vld [vmem:[%s1743_s3 + $0x3] ss:$0 sm:$0xff]  ;;  %s1454_s3 = smov 97  }
 0xbd5   :  { %v1342_v61 = vpop.eup %1341 }
 0xbd6   :  { %v622_v62 = vadd.f32 1.0, %v1342_v61 }
 0xbd8   :  { %1343 = vrcp.f32 %v622_v62 }
 0xbe2   :  { %v1344_v63 = vpop.eup %1343 }
 0xbe3   :  { %v637_v12 = vsub.f32 1.0, %v1344_v63  ;;  %v643_v14 = vmul.f32 %v1344_v63, %v1619_v50 }
 0xc3b   :  { %v628_v2 = vpop.permute.xlu1 %627 }
 0xc3c   :  { %v630_v3 = vmul.f32 %v1344_v63, %v628_v2 }
 0xc3e   :  { %632 = vrot.lane.b32.xlu1 %v630_v3, %s1444_s10 }
 0xcb0   :  { %v633_v4 = vpop.permute.xlu1 %632 }
 0xcb1   :  { %v635_v5 = vadd.f32 %v633_v4, %v542_v57 }
 0xcb3   :  { %1345 = vtanh.f32 %v635_v5 }
 0xcbd   :  { %v1346_v7 = vpop.eup %1345 }
 0xcbe   :  { %639 = vrot.lane.b32.xlu0 %v1346_v7, %s1446_s16 }
 0xcc2   :  { %655 = vperm.xlu0 %1314, %v1516_v8  }
 0xcc6   :  { %1315 = vset.pattern.permute.xlu0 %v1452_v33 }
 0xd30   :  { %v640_v13 = vpop.permute.xlu0 %639 }
 0xd31   :  { %v642_v15 = vmul.f32 %v640_v13, %v637_v12 }
 0xd33   :  { %v1637_v17 = vadd.f32 %v643_v14, %v642_v15 }
 0xd35   :  { %661 = vrot.lane.b32.xlu1 %v1637_v17, %s1446_s16 }
 0xd41   :  { %v656_v23 = vpop.permute.xlu0 %655 }
 0xd42   :  { %v658_v24 = vmul.f32 %v1550_v16, %v656_v23 }
 0xd44   :  { %v659_v25 = vadd.f32 %v1556_v18, %v658_v24 }
 0xda7   :  { %v662_v19 = vpop.permute.xlu1 %661 }
 0xda8   :  { %1211 = vmatmul.mubr.msk.f32.vlgmr.msra.gmra.mrb[4].mxu1 %vm60_vm1, %v662_v19 }
 0xda9   :  { %1279 = vmatpush3.bf16.msra.mxu1 %v1511_v6  ;;  %1232 = vmatprep.mubr.msk.f32.mxu1 %vm1441_vm0, %v1442_v1 }
 0xdaa   :  { %1280 = vmatprep.subr.bf16.mxu1 %v1440_v0 }
 0xdad   :  { %1282 = vmatpush3.bf16.msra.mxu1 %v1520_v9 }
 0xe7b   :  { %v731_v20 = vpop.f32.mrb[4].mxu1 }
 0xe7c   :  { %v742_v21 = vadd.f32 %v1542_v11, %v731_v20  ;;  %v1212_v22 = vpop.f32.mrb[5].mxu1  ;;  %v735_v27 = vadd.f32 %v731_v20, %v659_v25 }
 0xe7e   :  { %744 = vrot.lane.b32.xlu1 %v742_v21, %s1444_s10  ;;  %v1102_v6 = vmul.f32 -1.442695, %v735_v27 }
 0xe80   :  { %1347 = vpow2.f32 %v1102_v6 }
 0xe8a   :  { %v1348_v28 = vpop.eup %1347 }
 0xe8b   :  { %v739_v1 = vadd.f32 1.0, %v1348_v28 }
 0xe8d   :  { %1349 = vrcp.f32 %v739_v1 }
 0xe97   :  { %v1350_v0 = vpop.eup %1349 }
 0xe98   :  { %v754_v34 = vsub.f32 1.0, %v1350_v0  ;;  %v760_v37 = vmul.f32 %v1350_v0, %v1637_v17 }
 0xef0   :  { %v745_v29 = vpop.permute.xlu1 %744 }
 0xef1   :  { %v747_v9 = vmul.f32 %v1350_v0, %v745_v29 }
 0xef3   :  { %749 = vrot.lane.b32.xlu1 %v747_v9, %s1444_s10 }
 0xf65   :  { %v750_v30 = vpop.permute.xlu1 %749 }
 0xf66   :  { %v752_v31 = vadd.f32 %v750_v30, %v659_v25 }
 0xf68   :  { %1351 = vtanh.f32 %v752_v31 }
 0xf72   :  { %v1352_v32 = vpop.eup %1351 }
 0xf73   :  { %756 = vrot.lane.b32.xlu0 %v1352_v32, %s1446_s16 }
 0xf77   :  { %772 = vperm.xlu0 %1315, %v1516_v8  }
 0xf7b   :  { %1316 = vset.pattern.permute.xlu0 %v1453_v55 }
 0xfe5   :  { %v757_v35 = vpop.permute.xlu0 %756 }
 0xfe6   :  { %v759_v38 = vmul.f32 %v757_v35, %v754_v34 }
 0xfe8   :  { %v1655_v39 = vadd.f32 %v760_v37, %v759_v38 }
 0xfea   :  { %778 = vrot.lane.b32.xlu1 %v1655_v39, %s1446_s16 }
 0xff6   :  { %v773_v44 = vpop.permute.xlu0 %772 }
 0xff7   :  { %v775_v45 = vmul.f32 %v1550_v16, %v773_v44 }
 0xff9   :  { %v776_v46 = vadd.f32 %v1556_v18, %v775_v45 }
0x105c   :  { %v779_v40 = vpop.permute.xlu1 %778 }
0x105d   :  { %1222 = vmatmul.mubr.msk.f32.vlgmr.msra.gmra.mrb[6].mxu0 %vm60_vm1, %v779_v40 }
0x1130   :  { %v848_v41 = vpop.f32.mrb[6].mxu0 }
0x1131   :  { %v859_v42 = vadd.f32 %v1542_v11, %v848_v41  ;;  %v1223_v43 = vpop.f32.mrb[7].mxu0  ;;  %v852_v47 = vadd.f32 %v848_v41, %v776_v46 }
0x1133   :  { %861 = vrot.lane.b32.xlu1 %v859_v42, %s1444_s10  ;;  %v1104_v48 = vmul.f32 -1.442695, %v852_v47 }
0x1135   :  { %1353 = vpow2.f32 %v1104_v48 }
0x113f   :  { %v1354_v49 = vpop.eup %1353 }
0x1140   :  { %v856_v51 = vadd.f32 1.0, %v1354_v49 }
0x1142   :  { %1355 = vrcp.f32 %v856_v51 }
0x114c   :  { %v1356_v52 = vpop.eup %1355 }
0x114d   :  { %v871_v61 = vsub.f32 1.0, %v1356_v52  ;;  %v877_v63 = vmul.f32 %v1356_v52, %v1655_v39 }
0x11a5   :  { %v862_v53 = vpop.permute.xlu1 %861 }
0x11a6   :  { %v864_v54 = vmul.f32 %v1356_v52, %v862_v53 }
0x11a8   :  { %866 = vrot.lane.b32.xlu1 %v864_v54, %s1444_s10 }
0x121a   :  { %v867_v56 = vpop.permute.xlu1 %866 }
0x121b   :  { %v869_v57 = vadd.f32 %v867_v56, %v776_v46 }
0x121d   :  { %1357 = vtanh.f32 %v869_v57 }
0x1227   :  { %v1358_v58 = vpop.eup %1357 }
0x1228   :  { %873 = vrot.lane.b32.xlu0 %v1358_v58, %s1446_s16 }
0x122c   :  { %889 = vperm.xlu0 %1316, %v1516_v8  }
0x1230   :  { %173 = vrot.lane.b32.xlu0 %v1670_v60, %s1445_s11 }
0x129a   :  { %v874_v62 = vpop.permute.xlu0 %873 }
0x129b   :  { %v876_v2 = vmul.f32 %v874_v62, %v871_v61 }
0x129d   :  { %v878_v3 = vadd.f32 %v877_v63, %v876_v2 }
0x129f   :  { %895 = vrot.lane.b32.xlu1 %v878_v3, %s1446_s16 }
0x12ab   :  { %v890_v10 = vpop.permute.xlu0 %889 }
0x12ac   :  { %v892_v12 = vmul.f32 %v1550_v16, %v890_v10 }
0x12ae   :  { %v893_v13 = vadd.f32 %v1556_v18, %v892_v12 }
0x12af   :  { %v174_v24 = vpop.permute.xlu0 %173 }
0x12b0   :  { %v294_v16 = vmul.f32 %v1581_v59, %v174_v24  ;;  %v528_v59 = vmul.f32 %v1619_v50, %v174_v24  ;;  %v762_v35 = vmul.f32 %v1655_v39, %v174_v24  ;;  %v645_v38 = vmul.f32 %v1637_v17, %v174_v24 }
0x12b1   :  { %v879_v41 = vmul.f32 %v878_v3, %v174_v24 }
0x1311   :  { %v896_v4 = vpop.permute.xlu1 %895 }
0x1312   :  { %1233 = vmatmul.mubr.msk.f32.vlgmr.msra.gmra.mrb[6].mxu1 %vm60_vm1, %v896_v4 }
0x13e5   :  { %v965_v8 = vpop.f32.mrb[6].mxu1 }
0x13e6   :  { %v976_v5 = vadd.f32 %v1542_v11, %v965_v8  ;;  %v1234_v7 = vpop.f32.mrb[7].mxu1  ;;  %v969_v14 = vadd.f32 %v965_v8, %v893_v13  ;;  %v176_v11 = vmul.f32 %v174_v24, %v1562_v36  ;;  %v411_v36 = vmul.f32 %v1600_v26, %v174_v24 }
0x13e8   :  { %978 = vrot.lane.b32.xlu1 %v976_v5, %s1444_s10  ;;  %v1106_v15 = vmul.f32 -1.442695, %v969_v14 }
0x13ea   :  { %1359 = vpow2.f32 %v1106_v15 }
0x13f4   :  { %v1360_v19 = vpop.eup %1359 }
0x13f5   :  { %v973_v20 = vadd.f32 1.0, %v1360_v19 }
0x13f7   :  { %1361 = vrcp.f32 %v973_v20 }
0x1401   :  { %v1362_v21 = vpop.eup %1361 }
0x1402   :  { %v988_v34 = vsub.f32 1.0, %v1362_v21  ;;  %v994_v50 = vmul.f32 %v1362_v21, %v878_v3 }
0x145a   :  { %v979_v22 = vpop.permute.xlu1 %978 }
0x145b   :  { %v981_v23 = vmul.f32 %v1362_v21, %v979_v22 }
0x145d   :  { %983 = vrot.lane.b32.xlu1 %v981_v23, %s1444_s10 }
0x1461   :  { %178 = vrot.lane.b32.xlu1 %v176_v11, %s1446_s16 }
0x1465   :  { %296 = vrot.lane.b32.xlu1 %v294_v16, %s1446_s16 }
0x14cf   :  { %v984_v18 = vpop.permute.xlu1 %983 }
0x14d0   :  { %v986_v1 = vadd.f32 %v984_v18, %v893_v13 }
0x14d2   :  { %1363 = vtanh.f32 %v986_v1 }
0x14d3   :  { %v179_v25 = vpop.permute.xlu1 %178 }
0x14d4   :  { %v182_v27 = vsel %vm181_vm2, %v179_v25, 0.0 }
0x14d5   :  { %183 = vadd.xlane.f32.xlu0 %v182_v27 }
0x14d7   :  { %v297_v6 = vpop.permute.xlu1 %296 }
0x14d8   :  { %v299_v28 = vsel %vm181_vm2, %v297_v6, 0.0 }
0x14d9   :  { %300 = vadd.xlane.f32.xlu1 %v299_v28 }
0x14dc   :  { %v1364_v0 = vpop.eup %1363 }
0x14ea   :  { %413 = vrot.lane.b32.xlu1 %v411_v36, %s1446_s16 }
0x14eb   :  { %990 = vrot.lane.b32.xlu0 %v1364_v0, %s1446_s16 }
0x14ee   :  { %530 = vrot.lane.b32.xlu1 %v528_v59, %s1446_s16 }
0x1562   :  { %v184_v33 = vpop.xlane.xlu0 %183 }
0x1563   :  { %v185_v54 = vadd.f32 %v1670_v60, %v184_v33 }
0x1566   :  { %v301_v29 = vpop.xlane.xlu1 %300  ;;  %v991_v26 = vpop.permute.xlu0 %990 }
0x1567   :  { %v993_v37 = vmul.f32 %v991_v26, %v988_v34  ;;  %v302_v52 = vadd.f32 %v1670_v60, %v301_v29 }
0x1569   :  { %v995_v40 = vadd.f32 %v994_v50, %v993_v37 }
0x156a   :  { %v414_v9 = vpop.permute.xlu1 %413 }
0x156b   :  { %v416_v30 = vsel %vm181_vm2, %v414_v9, 0.0  ;;  %v996_v42 = vmul.f32 %v995_v40, %v174_v24 }
0x156c   :  { %417 = vadd.xlane.f32.xlu0 %v416_v30 }
0x156e   :  { %v531_v31 = vpop.permute.xlu1 %530 }
0x156f   :  { %v533_v32 = vsel %vm181_vm2, %v531_v31, 0.0 }
0x1570   :  { %534 = vadd.xlane.f32.xlu1 %v533_v32 }
0x1581   :  { %764 = vrot.lane.b32.xlu1 %v762_v35, %s1446_s16 }
0x1582   :  { %647 = vrot.lane.b32.xlu0 %v645_v38, %s1446_s16 }
0x1586   :  { %881 = vrot.lane.b32.xlu0 %v879_v41, %s1446_s16 }
0x158a   :  { %998 = vrot.lane.b32.xlu0 %v996_v42, %s1446_s16 }
0x15f9   :  { %v418_v43 = vpop.xlane.xlu0 %417 }
0x15fa   :  { %v419_v53 = vadd.f32 %v1670_v60, %v418_v43 }
0x15fd   :  { %v648_v44 = vpop.permute.xlu0 %647  ;;  %v535_v45 = vpop.xlane.xlu1 %534 }
0x15fe   :  { %v650_v39 = vsel %vm181_vm2, %v648_v44, 0.0  ;;  %v536_v55 = vadd.f32 %v1670_v60, %v535_v45 }
0x15ff   :  { %651 = vadd.xlane.f32.xlu0 %v650_v39 }
0x1601   :  { %v882_v46 = vpop.permute.xlu0 %881  ;;  %v765_v17 = vpop.permute.xlu1 %764 }
0x1602   :  { %v884_v47 = vsel %vm181_vm2, %v882_v46, 0.0  ;;  %v767_v48 = vsel %vm181_vm2, %v765_v17, 0.0 }
0x1603   :  { %885 = vadd.xlane.f32.xlu0 %v884_v47  ;;  %768 = vadd.xlane.f32.xlu1 %v767_v48 }
0x1605   :  { %v999_v49 = vpop.permute.xlu0 %998 }
0x1606   :  { %v1001_v51 = vsel %vm181_vm2, %v999_v49, 0.0 }
0x1607   :  { %1002 = vadd.xlane.f32.xlu0 %v1001_v51 }
0x1614   :  { %1006 = vrot.lane.b32.xlu1 %v995_v40, %s1446_s16 }
0x1618   :  { %1015 = vrot.lane.b32.xlu1 %v302_v52, %s1454_s3 }
0x161c   :  { %1019 = vrot.lane.b32.xlu1 %v419_v53, %s1455_s19 }
0x161d   :  { %1011 = vrot.lane.b32.xlu0 %v185_v54, %s1446_s16 }
0x1621   :  { %1023 = vrot.lane.b32.xlu0 %v536_v55, %s1456_s20 }
0x168c   :  { %v652_v56 = vpop.xlane.xlu0 %651 }
0x168d   :  { %v653_v57 = vadd.f32 %v1670_v60, %v652_v56 }
0x168f   :  { %1027 = vrot.lane.b32.xlu1 %v653_v57, %s1457_s21 }
0x1690   :  { %v886_v58 = vpop.xlane.xlu0 %885  ;;  %v769_v61 = vpop.xlane.xlu1 %768 }
0x1691   :  { %v887_v62 = vadd.f32 %v1670_v60, %v886_v58  ;;  %v770_v63 = vadd.f32 %v1670_v60, %v769_v61 }
0x1693   :  { %1035 = vrot.lane.b32.xlu1 %v887_v62, %s1459_s24  ;;  %1031 = vrot.lane.b32.xlu0 %v770_v63, %s1460_s25 }
0x1694   :  { %v1003_v2 = vpop.xlane.xlu0 %1002  ;;  %v1007_v3 = vpop.permute.xlu1 %1006 }
0x1695   :  { %v1004_v4 = vadd.f32 %v1670_v60, %v1003_v2  ;;  %1009 = vst.msk [vmem:[#allocation6] sm:$0x3] %vm181_vm2, %v1007_v3 }
0x1696   :  { %1398 = shalt.err (!%p1395_p12)
}
0x1697   :  { %s1399_s29 = scalar_lea.hbm %s1745_s5, 32 }
0x1698   :  { %p1400_p13 = scmp.ne.s32.totalorder %s1745_s5, %s1399_s29  ;;  %p1403_p0 = scmp.lt.u32.totalorder %s1399_s29, %s1745_s5 }
0x169a   :  { %p1405_p1 = pnand %p1403_p0, %p1400_p13 }
0x169c   :  { %1408 = shalt.err (!%p1405_p1)
}
0x169d   :  { %1077 = dma.vmem_to_hbm [thread:$0]  %s1075_s23, 32, %s1745_s5, [#allocation7]   ;;  %v1016_v60 = vpop.permute.xlu1 %1015  ;;  %v1012_v8 = vpop.permute.xlu0 %1011  ;;  %vm1042_vm3 = vcmask 7168   ;;  %vm1044_vm4 = vcmask 15360   ;;  %vm1046_vm5 = vcmask 23552   ;;  %vm1048_vm6 = vcmask 31744  }
0x169e   :  { %s1461_s0 = smov 103   ;;  %v1043_v7 = vsel %vm1042_vm3, %v1012_v8, %v1016_v60  ;;  %vm1050_vm7 = vcmask 39936   ;;  %vm1052_vm8 = vcmask 48128   ;;  %s1462_s5 = smov [#allocation5]   ;;  %vm1054_vm9 = vcmask 56320  }
0x169f   :  { %1039 = vrot.lane.b32.xlu0 %v1004_v4, %s1461_s0  ;;  %s1064_s1 = sshll.u32 %s1462_s5, 4  ;;  %vm1056_vm10 = vcmask 58368   ;;  %s1065_s1 = int_to_ptr.vmem [resolvable:$true] %s1064_s1 }
0x16a0   :  { %s1409_s10 = scalar_lea.vmem %s1065_s1, 32  ;;  %p1414_p3 = scmp.lt.s32.totalorder %s1065_s1, %s1065_s1 }
0x16a1   :  { %v1020_v5 = vpop.permute.xlu1 %1019  ;;  %v1024_v10 = vpop.permute.xlu0 %1023  ;;  %p1410_p2 = scmp.ne.s32.totalorder %s1065_s1, %s1409_s10  ;;  %p1415_p4 = scmp.lt.s32.totalorder %s1409_s10, %s1409_s10 }
0x16a2   :  { %v1045_v12 = vsel %vm1044_vm4, %v1043_v7, %v1020_v5 }
0x16a3   :  { %v1047_v14 = vsel %vm1046_vm5, %v1045_v12, %v1024_v10  ;;  %p1416_p5 = por %p1415_p4, %p1414_p3 }
0x16a5   :  { %p1417_p6 = pnand %p1416_p5, %p1410_p2 }
0x1701   :  { %v1028_v13 = vpop.permute.xlu1 %1027 }
0x1702   :  { %v1049_v15 = vsel %vm1048_vm6, %v1047_v14, %v1028_v13 }
0x1705   :  { %v1032_v19 = vpop.permute.xlu0 %1031  ;;  %v1036_v21 = vpop.permute.xlu1 %1035 }
0x1706   :  { %v1051_v20 = vsel %vm1050_vm7, %v1049_v15, %v1032_v19 }
0x1707   :  { %v1053_v22 = vsel %vm1052_vm8, %v1051_v20, %v1036_v21 }
0x1711   :  { %v1040_v23 = vpop.permute.xlu0 %1039 }
0x1712   :  { %v1055_v24 = vsel %vm1054_vm9, %v1053_v22, %v1040_v23 }
0x1713   :  { %1057 = vst.msk [vmem:[#allocation5] sm:$0x3] %vm1056_vm10, %v1055_v24 }
0x1714   :  { %1420 = shalt.err (!%p1417_p6)
}
0x1715   :  { %s1421_s13 = scalar_lea.hbm %s1744_s4, 32 }
0x1716   :  { %p1422_p7 = scmp.ne.s32.totalorder %s1744_s4, %s1421_s13  ;;  %p1425_p8 = scmp.lt.u32.totalorder %s1421_s13, %s1744_s4 }
0x1718   :  { %p1427_p9 = pnand %p1425_p8, %p1422_p7 }
0x171a   :  { %1430 = shalt.err (!%p1427_p9)
}
0x171b   :  { %1067 = dma.vmem_to_hbm [thread:$0]  %s1065_s1, 32, %s1744_s4, [#allocation4]  }
0x171c   :  { %1433 = dma.done.wait [#allocation4], 32  }
0x171d   :  { %1434 = vsyncadd [#allocation4], 4294967264 }
0x171e   :  { %1435 = dma.done.wait [#allocation7], 32  }
0x171f   :  { %1436 = vsyncadd [#allocation7], 4294967264 }
0x1720   :  { %1084 = vsyncpa [#allocation3], 1 }
0x1721   :  { %1085 = vsyncpa [#allocation4], 1 }
0x1722   :  { %1086 = vsyncpa [#allocation7], 1 }

</bundles_post_ra>
